<compile_context>
chip_gen: v6e
topology: v6e:2x2x1
jax: 0.10.0
libtpu: 0.0.40
codegen_flags: <defaults>
</compile_context>

<pallas_src>
import functools

import numpy as np

import jax
import jax.numpy as jnp
from jax.experimental import pallas as pl
from jax.experimental.pallas import tpu as pltpu


def _round_up(v, m):
    return (v + m - 1) // m * m


def _cdiv(a, b):
    return -(-a // b)


def _unfold_kernel(x_ref, mask_ref, o_ref, scr_ref, *, W, kh, kw, HW, pre_al):
    """One grid step: unfold a (rows, HW) slab of flattened images.

    x_ref   : (rows, HW)         flattened NCHW rows (no XLA-side padding)
    mask_ref: (kw, HW)           per-horizontal-offset column-wrap masks, in x.dtype
    o_ref   : (rows, kh*kw*HW)   one width-HW slab per (i, j) kernel offset
    scr_ref : (rows, w_tot)      VMEM scratch: [zeros | image | zeros]
    """
    rows = x_ref.shape[0]
    w_tot = scr_ref.shape[1]
    dt = x_ref.dtype
    pad_top = kh - 1 - kh // 2
    pad_left = kw - 1 - kw // 2

    # Build the zero-bordered flat row in VMEM.  This replaces the XLA-side jnp.pad
    # (an extra HBM read+write of the input) with a VMEM-local copy that is hidden
    # under the HBM DMAs.  Borders are re-zeroed every step because the scratch
    # persists across grid steps / cores; the payload region is fully overwritten.
    if pre_al > 0:
        scr_ref[:, :pre_al] = jnp.zeros((rows, pre_al), dt)
    tail = w_tot - pre_al - HW
    if tail > 0:
        scr_ref[:, pre_al + HW:] = jnp.zeros((rows, tail), dt)
    scr_ref[:, pre_al:pre_al + HW] = x_ref[...]

    for j in range(kw):
        dj = j - pad_left
        # Hoisted per-j column mask row (1, HW); rows broadcast implicitly in the
        # multiply below (single vmul per offset, no explicit broadcast_to / compare).
        m_j = mask_ref[j:j + 1, :] if dj != 0 else None
        for i in range(kh):
            # Flattened shift of kernel offset (i, j): row overflow lands in the zero
            # border regions of the scratch; column wrap-around lanes are masked.
            start = pre_al + (i - pad_top) * W + dj   # static lane offset
            win = scr_ref[:, start:start + HW]
            if m_j is not None:
                win = win * m_j
            k = i * kw + j
            o_ref[:, k * HW:(k + 1) * HW] = win       # dense when HW % 128 == 0


def global_local_converter(x, local_size, *, target_block_bytes=2 * 1024 * 1024):
    """Pallas equivalent of GlobalLocalConverter(local_size).forward(x); x is NCHW."""
    kh, kw = local_size
    N, C, H, W = x.shape
    KK = kh * kw
    NC, HW = N * C, H * W

    # Same padding split as the PyTorch module: [t-1-t//2 (leading), t//2 (trailing)].
    pad_top, pad_bot = kh - 1 - kh // 2, kh // 2
    pad_left, pad_right = kw - 1 - kw // 2, kw // 2
    pre = pad_top * W + pad_left        # largest negative flattened window shift
    post = pad_bot * W + pad_right      # largest positive flattened window shift
    pre_al = _round_up(pre, 128)        # lane-align the leading zero border
    w_tot = _round_up(pre_al + HW + post, 128)

    # Free reshape -- NO jnp.pad and therefore no extra HBM copy of the input.
    x_flat = x.reshape(NC, HW)

    # Per-horizontal-offset column-wrap masks (1 where the shifted column stays inside
    # the image), stored in x.dtype so in-kernel masking is a single vmul.
    ow = np.arange(HW, dtype=np.int64) % W
    mask_np = np.zeros((kw, HW), dtype=np.float32)
    for j in range(kw):
        dj = j - pad_left
        mask_np[j] = ((ow + dj >= 0) & (ow + dj < W)).astype(np.float32)
    col_mask = jnp.asarray(mask_np).astype(x.dtype)

    # ---- row-block (grid) selection ------------------------------------------------
    isz = jnp.dtype(x.dtype).itemsize
    sub = 8 * max(1, 4 // isz)              # dtype-aware sublane unit: 8/16/32 rows
    row_out_bytes = KK * HW * isz           # output bytes produced per input row
    n_units = _cdiv(NC, sub)                # NC measured in `sub`-row units
    # Per-step output payload budget (~1-4 MiB keeps DMAs efficient while leaving
    # enough grid steps for the pipeline to overlap input fetch and output writeback).
    u_budget = max(1, target_block_bytes // max(1, sub * row_out_bytes))
    if n_units <= 1:
        u = 1
    else:
        pref_blocks = 4 if n_units >= 4 else 2          # aim for >=4 pipelined steps
        u_max = max(1, min(u_budget, n_units // pref_blocks))
        u = u_max
        for cand in range(u_max, 0, -1):                # prefer an even block count so
            if _cdiv(n_units, cand) % 2 == 0:           # both v7x TensorCores get
                u = cand                                # equal halves of the axis
                break
    nc_blk = NC if NC <= sub else min(u * sub, _round_up(NC, sub))
    g_blocks = _cdiv(NC, nc_blk)

    # Explicit, generation-safe VMEM limit (>= the v6e/v7x scoped default, above the
    # v5e 16 MiB default, never above v7x's 64 MiB physical per-TC capacity).
    est = isz * nc_blk * (2 * HW + 2 * KK * HW + w_tot) + kw * HW * isz
    vmem_limit = int(min(64 * 1024 * 1024, max(32 * 1024 * 1024, 2 * est)))

    kernel = functools.partial(_unfold_kernel, W=W, kh=kh, kw=kw, HW=HW, pre_al=pre_al)

    out = pl.pallas_call(
        kernel,
        out_shape=jax.ShapeDtypeStruct((NC, KK * HW), x.dtype),
        grid=(g_blocks,),
        in_specs=[
            pl.BlockSpec((nc_blk, HW), lambda g: (g, 0)),
            pl.BlockSpec((kw, HW), lambda g: (0, 0)),
        ],
        out_specs=pl.BlockSpec((nc_blk, KK * HW), lambda g: (g, 0)),
        scratch_shapes=[pltpu.VMEM((nc_blk, w_tot), x.dtype)],
        compiler_params=pltpu.CompilerParams(
            dimension_semantics=("parallel",),
            vmem_limit_bytes=vmem_limit),
    )(x_flat, col_mask)

    # (NC, KK*HW) -> (N, C*KK, H*W): adjacent-axis reshape only -> no copy, no de-pad.
    return out.reshape(N, C * KK, HW)


def _reference(x, local_size):
    """Pure-JAX reference of F.pad + F.unfold for correctness checking."""
    kh, kw = local_size
    N, C, H, W = x.shape
    pad_top, pad_bot = kh - 1 - kh // 2, kh // 2
    pad_l, pad_r = kw - 1 - kw // 2, kw // 2
    xp = jnp.pad(x, ((0, 0), (0, 0), (pad_top, pad_bot), (pad_l, pad_r)))
    cols = []
    for i in range(kh):
        for j in range(kw):
            cols.append(xp[:, :, i:i + H, j:j + W].reshape(N, C, H * W))
    out = jnp.stack(cols, axis=2)  # (N, C, kh*kw, H*W)
    return out.reshape(N, C * kh * kw, H * W)


if __name__ == "__main__":
    key = jax.random.PRNGKey(0)
    cases = [
        ((2, 4, 16, 16), (3, 3)),   # primary case: H*W multiple of 128 (aligned stores)
        ((2, 4, 16, 16), (2, 3)),   # even/asymmetric kernel -> uneven padding split
        ((2, 4, 14, 14), (3, 3)),   # H*W % 128 != 0 (in-kernel unaligned slabs, no de-pad)
        ((5, 4, 8, 16), (3, 3)),    # NC=20 -> partial final row block
        ((1, 3, 8, 16), (3, 3)),    # NC=3  -> sub-sublane (full-dim) row block
    ]
    for idx, (shape, ls) in enumerate(cases):
        x = jax.random.normal(jax.random.fold_in(key, idx), shape, dtype=jnp.float32)
        y = jax.block_until_ready(global_local_converter(x, ls))
        ref = _reference(x, ls)
        N, C, H, W = shape
        assert y.shape == (N, C * ls[0] * ls[1], H * W), (y.shape, shape, ls)
        assert jnp.array_equal(y, ref), f"mismatch for shape={shape} local_size={ls}"
    print("KERNEL_OK")
</pallas_src>

<mosaic_0001>
module attributes {stable_mosaic.version = 11 : i64} {
  func.func @_unfold_kernel(%arg0: i32, %arg1: memref<8x256xf32, #tpu.memory_space<vmem>>, %arg2: memref<3x256xf32, #tpu.memory_space<vmem>>, %arg3: memref<8x2304xf32, #tpu.memory_space<vmem>>, %arg4: memref<8x512xf32, #tpu.memory_space<vmem>>) attributes {dimension_semantics = [#tpu.dimension_semantics<parallel>], iteration_bounds = array<i64: 1>, scalar_prefetch = 0 : i64, scratch_operands = 1 : i64, tpu.core_type = #tpu.core_type<tc>, window_params = [{transform_indices = @transform_0, window_bounds = array<i64: 8, 256>}, {pipeline_mode = #tpu.pipeline_mode<synchronous>, transform_indices = @transform_1, window_bounds = array<i64: 3, 256>}, {transform_indices = @transform_2, window_bounds = array<i64: 8, 2304>}]} {
    %cst = arith.constant 0.000000e+00 : f32
    %0 = vector.broadcast %cst : f32 to vector<8x128xf32>
    %c0 = arith.constant 0 : index
    %c0_0 = arith.constant 0 : index
    %1 = vector.load %arg4[%c0, %c0_0] : memref<8x512xf32, #tpu.memory_space<vmem>>, vector<8x128xf32>
    tpu.vector_store %arg4[%c0, %c0_0], %0 {strides = array<i32>} : memref<8x512xf32, #tpu.memory_space<vmem>>, vector<8x128xf32>,
    %cst_1 = arith.constant 0.000000e+00 : f32
    %2 = vector.broadcast %cst_1 : f32 to vector<8x128xf32>
    %c0_2 = arith.constant 0 : index
    %c384 = arith.constant 384 : index
    %3 = vector.load %arg4[%c0_2, %c384] : memref<8x512xf32, #tpu.memory_space<vmem>>, vector<8x128xf32>
    tpu.vector_store %arg4[%c0_2, %c384], %2 {strides = array<i32>} : memref<8x512xf32, #tpu.memory_space<vmem>>, vector<8x128xf32>,
    %c0_3 = arith.constant 0 : index
    %c0_4 = arith.constant 0 : index
    %4 = vector.load %arg1[%c0_3, %c0_4] : memref<8x256xf32, #tpu.memory_space<vmem>>, vector<8x256xf32>
    %c0_5 = arith.constant 0 : index
    %c128 = arith.constant 128 : index
    %5 = vector.load %arg4[%c0_5, %c128] : memref<8x512xf32, #tpu.memory_space<vmem>>, vector<8x256xf32>
    tpu.vector_store %arg4[%c0_5, %c128], %4 {strides = array<i32>} : memref<8x512xf32, #tpu.memory_space<vmem>>, vector<8x256xf32>,
    %c0_6 = arith.constant 0 : index
    %c0_7 = arith.constant 0 : index
    %6 = vector.load %arg2[%c0_6, %c0_7] : memref<3x256xf32, #tpu.memory_space<vmem>>, vector<1x256xf32>
    %c0_8 = arith.constant 0 : index
    %c111 = arith.constant 111 : index
    %7 = vector.load %arg4[%c0_8, %c111] : memref<8x512xf32, #tpu.memory_space<vmem>>, vector<8x256xf32>
    %8 = vector.broadcast %6 : vector<1x256xf32> to vector<8x256xf32>
    %9 = arith.mulf %7, %8 : vector<8x256xf32>
    %c0_9 = arith.constant 0 : index
    %c0_10 = arith.constant 0 : index
    %10 = vector.load %arg3[%c0_9, %c0_10] : memref<8x2304xf32, #tpu.memory_space<vmem>>, vector<8x256xf32>
    tpu.vector_store %arg3[%c0_9, %c0_10], %9 {strides = array<i32>} : memref<8x2304xf32, #tpu.memory_space<vmem>>, vector<8x256xf32>,
    %c0_11 = arith.constant 0 : index
    %c127 = arith.constant 127 : index
    %11 = vector.load %arg4[%c0_11, %c127] : memref<8x512xf32, #tpu.memory_space<vmem>>, vector<8x256xf32>
    %12 = vector.broadcast %6 : vector<1x256xf32> to vector<8x256xf32>
    %13 = arith.mulf %11, %12 : vector<8x256xf32>
    %c0_12 = arith.constant 0 : index
    %c768 = arith.constant 768 : index
    %14 = vector.load %arg3[%c0_12, %c768] : memref<8x2304xf32, #tpu.memory_space<vmem>>, vector<8x256xf32>
    tpu.vector_store %arg3[%c0_12, %c768], %13 {strides = array<i32>} : memref<8x2304xf32, #tpu.memory_space<vmem>>, vector<8x256xf32>,
    %c0_13 = arith.constant 0 : index
    %c143 = arith.constant 143 : index
    %15 = vector.load %arg4[%c0_13, %c143] : memref<8x512xf32, #tpu.memory_space<vmem>>, vector<8x256xf32>
    %16 = vector.broadcast %6 : vector<1x256xf32> to vector<8x256xf32>
    %17 = arith.mulf %15, %16 : vector<8x256xf32>
    %c0_14 = arith.constant 0 : index
    %c1536 = arith.constant 1536 : index
    %18 = vector.load %arg3[%c0_14, %c1536] : memref<8x2304xf32, #tpu.memory_space<vmem>>, vector<8x256xf32>
    tpu.vector_store %arg3[%c0_14, %c1536], %17 {strides = array<i32>} : memref<8x2304xf32, #tpu.memory_space<vmem>>, vector<8x256xf32>,
    %c0_15 = arith.constant 0 : index
    %c112 = arith.constant 112 : index
    %19 = vector.load %arg4[%c0_15, %c112] : memref<8x512xf32, #tpu.memory_space<vmem>>, vector<8x256xf32>
    %c0_16 = arith.constant 0 : index
    %c256 = arith.constant 256 : index
    %20 = vector.load %arg3[%c0_16, %c256] : memref<8x2304xf32, #tpu.memory_space<vmem>>, vector<8x256xf32>
    tpu.vector_store %arg3[%c0_16, %c256], %19 {strides = array<i32>} : memref<8x2304xf32, #tpu.memory_space<vmem>>, vector<8x256xf32>,
    %c0_17 = arith.constant 0 : index
    %c128_18 = arith.constant 128 : index
    %21 = vector.load %arg4[%c0_17, %c128_18] : memref<8x512xf32, #tpu.memory_space<vmem>>, vector<8x256xf32>
    %c0_19 = arith.constant 0 : index
    %c1024 = arith.constant 1024 : index
    %22 = vector.load %arg3[%c0_19, %c1024] : memref<8x2304xf32, #tpu.memory_space<vmem>>, vector<8x256xf32>
    tpu.vector_store %arg3[%c0_19, %c1024], %21 {strides = array<i32>} : memref<8x2304xf32, #tpu.memory_space<vmem>>, vector<8x256xf32>,
    %c0_20 = arith.constant 0 : index
    %c144 = arith.constant 144 : index
    %23 = vector.load %arg4[%c0_20, %c144] : memref<8x512xf32, #tpu.memory_space<vmem>>, vector<8x256xf32>
    %c0_21 = arith.constant 0 : index
    %c1792 = arith.constant 1792 : index
    %24 = vector.load %arg3[%c0_21, %c1792] : memref<8x2304xf32, #tpu.memory_space<vmem>>, vector<8x256xf32>
    tpu.vector_store %arg3[%c0_21, %c1792], %23 {strides = array<i32>} : memref<8x2304xf32, #tpu.memory_space<vmem>>, vector<8x256xf32>,
    %c2 = arith.constant 2 : index
    %c0_22 = arith.constant 0 : index
    %25 = vector.load %arg2[%c2, %c0_22] : memref<3x256xf32, #tpu.memory_space<vmem>>, vector<1x256xf32>
    %c0_23 = arith.constant 0 : index
    %c113 = arith.constant 113 : index
    %26 = vector.load %arg4[%c0_23, %c113] : memref<8x512xf32, #tpu.memory_space<vmem>>, vector<8x256xf32>
    %27 = vector.broadcast %25 : vector<1x256xf32> to vector<8x256xf32>
    %28 = arith.mulf %26, %27 : vector<8x256xf32>
    %c0_24 = arith.constant 0 : index
    %c512 = arith.constant 512 : index
    %29 = vector.load %arg3[%c0_24, %c512] : memref<8x2304xf32, #tpu.memory_space<vmem>>, vector<8x256xf32>
    tpu.vector_store %arg3[%c0_24, %c512], %28 {strides = array<i32>} : memref<8x2304xf32, #tpu.memory_space<vmem>>, vector<8x256xf32>,
    %c0_25 = arith.constant 0 : index
    %c129 = arith.constant 129 : index
    %30 = vector.load %arg4[%c0_25, %c129] : memref<8x512xf32, #tpu.memory_space<vmem>>, vector<8x256xf32>
    %31 = vector.broadcast %25 : vector<1x256xf32> to vector<8x256xf32>
    %32 = arith.mulf %30, %31 : vector<8x256xf32>
    %c0_26 = arith.constant 0 : index
    %c1280 = arith.constant 1280 : index
    %33 = vector.load %arg3[%c0_26, %c1280] : memref<8x2304xf32, #tpu.memory_space<vmem>>, vector<8x256xf32>
    tpu.vector_store %arg3[%c0_26, %c1280], %32 {strides = array<i32>} : memref<8x2304xf32, #tpu.memory_space<vmem>>, vector<8x256xf32>,
    %c0_27 = arith.constant 0 : index
    %c145 = arith.constant 145 : index
    %34 = vector.load %arg4[%c0_27, %c145] : memref<8x512xf32, #tpu.memory_space<vmem>>, vector<8x256xf32>
    %35 = vector.broadcast %25 : vector<1x256xf32> to vector<8x256xf32>
    %36 = arith.mulf %34, %35 : vector<8x256xf32>
    %c0_28 = arith.constant 0 : index
    %c2048 = arith.constant 2048 : index
    %37 = vector.load %arg3[%c0_28, %c2048] : memref<8x2304xf32, #tpu.memory_space<vmem>>, vector<8x256xf32>
    tpu.vector_store %arg3[%c0_28, %c2048], %36 {strides = array<i32>} : memref<8x2304xf32, #tpu.memory_space<vmem>>, vector<8x256xf32>,
    return
  }
  func.func @transform_0(%arg0: i32) -> (i32, i32) {
    %c0_i32 = arith.constant 0 : i32
    %c0_i32_0 = arith.constant 0 : i32
    return %arg0, %c0_i32 : i32, i32
  }
  func.func @transform_1(%arg0: i32) -> (i32, i32) {
    %c0_i32 = arith.constant 0 : i32
    %c0_i32_0 = arith.constant 0 : i32
    %c0_i32_1 = arith.constant 0 : i32
    return %c0_i32, %c0_i32_0 : i32, i32
  }
  func.func @transform_2(%arg0: i32) -> (i32, i32) {
    %c0_i32 = arith.constant 0 : i32
    %c0_i32_0 = arith.constant 0 : i32
    return %arg0, %c0_i32 : i32, i32
  }
}

</mosaic_0001>

<bundles_post_ra>
// kernel: tpu_custom_call.1
= control target key start
LH: loop header
LB: loop body
LE: loop exit
PB: predicated region body
PF: predicated region fallthrough
CT: control target
= control target key end

     0   :  { %7 = vsyncpa [#allocation4], 0  ;;  %s487_s0 = inlined_call_operand.hbm [shape: f32[8,256], index: 0, kind: input, shape index: {}]   ;;  %s488_s1 = inlined_call_operand.hbm [shape: f32[3,256], index: 1, kind: input, shape index: {}]   ;;  %s489_s2 = inlined_call_operand.hbm [shape: f32[8,2304], index: 2, kind: output, shape index: {}]  }
   0x1   :  { %8 = vsyncpa [#allocation7], 0 }
   0x2   :  { %9 = vsyncpa [#allocation5], 0  ;;  %s379_s9 = smov [#allocation3]   ;;  %s380_s11 = smov [#allocation6]  }
   0x3   :  { %s16_s10 = sshll.u32 %s379_s9, 4  ;;  %s26_s12 = sshll.u32 %s380_s11, 4  ;;  %s17_s10 = int_to_ptr.vmem [resolvable:$true] %s16_s10  ;;  %s27_s12 = int_to_ptr.vmem [resolvable:$true] %s26_s12 }
   0x4   :  { %s321_s13 = scalar_lea.vmem %s17_s10, 256  ;;  %p326_p1 = scmp.lt.s32.totalorder %s17_s10, %s17_s10 }
   0x5   :  { %p322_p0 = scmp.ne.s32.totalorder %s17_s10, %s321_s13  ;;  %p327_p2 = scmp.lt.s32.totalorder %s321_s13, %s321_s13 }
   0x7   :  { %p328_p3 = por %p327_p2, %p326_p1 }
   0x9   :  { %p329_p4 = pnand %p328_p3, %p322_p0 }
   0xb   :  { %332 = shalt.err (!%p329_p4)
}
   0xc   :  { %19 = dma.hbm_to_vmem [thread:$0]  %s487_s0, 256, %s17_s10, [#allocation4]  }
   0xd   :  { %s341_s16 = scalar_lea.vmem %s27_s12, 128  ;;  %p346_p6 = scmp.lt.s32.totalorder %s27_s12, %s27_s12 }
   0xe   :  { %p342_p5 = scmp.ne.s32.totalorder %s27_s12, %s341_s16  ;;  %p347_p7 = scmp.lt.s32.totalorder %s341_s16, %s341_s16 }
  0x10   :  { %p348_p8 = por %p347_p7, %p346_p6 }
  0x12   :  { %p349_p9 = pnand %p348_p8, %p342_p5 }
  0x14   :  { %352 = shalt.err (!%p349_p9)
}
  0x15   :  { %29 = dma.hbm_to_vmem [thread:$0]  %s488_s1, 128, %s27_s12, [#allocation7]  }
  0x16   :  { %373 = dma.done.wait [#allocation4], 256  }
  0x17   :  { %374 = vsyncadd [#allocation4], 4294967040 }
  0x18   :  { %375 = dma.done.wait [#allocation7], 128  }
  0x19   :  { %376 = vsyncadd [#allocation7], 4294967168  ;;  %v47_v0 = vlaneseq  ;;  %v42_v4 = vld [vmem:[#allocation6] ss:$4 sm:$0x3]  ;;  %v412_v6 = vld [vmem:[#allocation3] sm:$0xff] }
  0x1a   :  { %v414_v7 = vld [vmem:[#allocation3 + $0x8] sm:$0xff]  ;;  %166 = vst [vmem:[#allocation8 + $0x40] sm:$0xff] %v412_v6  ;;  %s381_s0 = smov 127   ;;  %s382_s1 = smov 111   ;;  %v387_v12 = vmov 0.0   ;;  %vm90_vm0 = vcmask 1039360  }
  0x1b   :  { %v48_v1 = vshrl.u32 %v47_v0, 7  ;;  %167 = vst [vmem:[#allocation8 + $0x48] sm:$0xff] %v414_v7  ;;  %v188_v9 = vld [vmem:[#allocation6 + $0x2] ss:$4 sm:$0x3]  ;;  %s383_s19 = smov 15  }
  0x1c   :  { %s384_s20 = smov 113   ;;  %s385_s21 = smov 1   ;;  %vm59_vm1 = vcmask 908288   ;;  %vm157_vm2 = vcmask 130048   ;;  %vm121_vm3 = vcmask 121856   ;;  %vm138_vm4 = vcmask 924672  }
  0x1d   :  { %v49_v2 = vsub.s32 0, %v48_v1  ;;  %v53_v3 = vsub.s32 1, %v48_v1  ;;  %s386_s22 = smov 17   ;;  %s388_s23 = smov 16   ;;  %vm107_vm5 = vcmask 7168   ;;  %vm76_vm6 = vcmask 138240  }
  0x1e   :  { %s389_s24 = smov 112   ;;  %vm180_vm7 = vcmask 916480   ;;  %s390_s25 = smov [#allocation8]  }
  0x1f   :  { %v50_v5 = vrot.slane %v42_v4, %v49_v2  ;;  %v54_v8 = vrot.slane %v42_v4, %v53_v3  ;;  %v200_v10 = vrot.slane %v188_v9, %v53_v3  ;;  %v196_v11 = vrot.slane %v188_v9, %v49_v2  ;;  %s291_s26 = sshll.u32 %s390_s25, 4  ;;  %s292_s26 = int_to_ptr.vmem [resolvable:$true] %s291_s26 }
  0x20   :  { %s353_s27 = scalar_lea.vmem %s292_s26, 2304  ;;  %p358_p11 = scmp.lt.s32.totalorder %s292_s26, %s292_s26 }
  0x21   :  { %86 = vrot.lane.b32.xlu1 %v50_v5, %s381_s0  ;;  %55 = vrot.lane.b32.xlu0 %v50_v5, %s382_s1  ;;  %p354_p10 = scmp.ne.s32.totalorder %s292_s26, %s353_s27  ;;  %p359_p12 = scmp.lt.s32.totalorder %s353_s27, %s353_s27 }
  0x23   :  { %p360_p13 = por %p359_p12, %p358_p11 }
  0x25   :  { %88 = vrot.lane.b32.xlu1 %v54_v8, %s381_s0  ;;  %57 = vrot.lane.b32.xlu0 %v54_v8, %s382_s1  ;;  %p361_p0 = pnand %p360_p13, %p354_p10 }
  0x29   :  { %119 = vrot.lane.b32.xlu1 %v54_v8, %s383_s19  ;;  %117 = vrot.lane.b32.xlu0 %v50_v5, %s383_s19 }
  0x2d   :  { %203 = vrot.lane.b32.xlu1 %v200_v10, %s384_s20  ;;  %201 = vrot.lane.b32.xlu0 %v196_v11, %s384_s20 }
  0x31   :  { %232 = vrot.lane.b32.xlu1 %v200_v10, %s385_s21  ;;  %230 = vrot.lane.b32.xlu0 %v196_v11, %s385_s21 }
  0x35   :  { %261 = vrot.lane.b32.xlu1 %v200_v10, %s386_s22  ;;  %259 = vrot.lane.b32.xlu0 %v196_v11, %s386_s22 }
  0x39   :  { %151 = vrot.lane.b32.xlu1 %v387_v12, %s388_s23  ;;  %153 = vrot.lane.b32.xlu0 %v412_v6, %s388_s23 }
  0x3d   :  { %155 = vrot.lane.b32.xlu1 %v414_v7, %s388_s23  ;;  %174 = vrot.lane.b32.xlu0 %v412_v6, %s389_s24 }
  0x41   :  { %176 = vrot.lane.b32.xlu1 %v414_v7, %s389_s24  ;;  %178 = vrot.lane.b32.xlu0 %v387_v12, %s389_s24 }
  0x93   :  { %v87_v13 = vpop.permute.xlu1 %86  ;;  %v56_v14 = vpop.permute.xlu0 %55 }
  0x94   :  { %v95_v15 = vmul.f32 0.0, %v87_v13  ;;  %v64_v16 = vmul.f32 0.0, %v56_v14 }
  0x96   :  { %70 = vrot.lane.b32.xlu0 %v64_v16, %s386_s22  ;;  %101 = vrot.lane.b32.xlu1 %v95_v15, %s385_s21 }
  0x97   :  { %v89_v17 = vpop.permute.xlu1 %88  ;;  %v58_v18 = vpop.permute.xlu0 %57 }
  0x98   :  { %v97_v19 = vmul.f32 %v89_v17, %v414_v7  ;;  %v66_v20 = vmul.f32 %v58_v18, %v414_v7  ;;  %v91_v36 = vsel %vm90_vm0, %v87_v13, %v89_v17  ;;  %v60_v37 = vsel %vm59_vm1, %v56_v14, %v58_v18 }
  0x99   :  { %v96_v40 = vmul.f32 %v91_v36, %v412_v6  ;;  %v65_v41 = vmul.f32 %v60_v37, %v412_v6 }
  0x9a   :  { %74 = vrot.lane.b32.xlu0 %v66_v20, %s386_s22  ;;  %105 = vrot.lane.b32.xlu1 %v97_v19, %s385_s21 }
  0x9b   :  { %v120_v21 = vpop.permute.xlu1 %119  ;;  %v118_v22 = vpop.permute.xlu0 %117 }
  0x9c   :  { %v126_v23 = vmul.f32 %v118_v22, %v412_v6  ;;  %v128_v24 = vmul.f32 0.0, %v120_v21  ;;  %v122_v43 = vsel %vm121_vm3, %v118_v22, %v120_v21 }
  0x9d   :  { %v127_v47 = vmul.f32 %v122_v43, %v414_v7 }
  0x9e   :  { %132 = vrot.lane.b32.xlu0 %v126_v23, %s384_s20 }
  0x9f   :  { %v204_v25 = vpop.permute.xlu1 %203  ;;  %v202_v26 = vpop.permute.xlu0 %201 }
  0xa0   :  { %v209_v27 = vmul.f32 0.0, %v202_v26  ;;  %v211_v28 = vmul.f32 %v204_v25, %v414_v7  ;;  %v205_v44 = vsel %vm138_vm4, %v202_v26, %v204_v25 }
  0xa1   :  { %v210_v48 = vmul.f32 %v205_v44, %v412_v6 }
  0xa2   :  { %215 = vrot.lane.b32.xlu1 %v209_v27, %s383_s19  ;;  %136 = vrot.lane.b32.xlu0 %v128_v24, %s384_s20 }
  0xa3   :  { %v233_v29 = vpop.permute.xlu1 %232  ;;  %v231_v30 = vpop.permute.xlu0 %230 }
  0xa4   :  { %v238_v31 = vmul.f32 %v231_v30, %v412_v6  ;;  %v240_v32 = vmul.f32 0.0, %v233_v29  ;;  %v234_v50 = vsel %vm107_vm5, %v231_v30, %v233_v29 }
  0xa5   :  { %v239_v54 = vmul.f32 %v234_v50, %v414_v7 }
  0xa6   :  { %219 = vrot.lane.b32.xlu1 %v211_v28, %s383_s19  ;;  %244 = vrot.lane.b32.xlu0 %v238_v31, %s381_s0 }
  0xa7   :  { %v262_v33 = vpop.permute.xlu1 %261  ;;  %v260_v34 = vpop.permute.xlu0 %259 }
  0xa8   :  { %v267_v35 = vmul.f32 %v260_v34, %v412_v6  ;;  %v263_v51 = vsel %vm76_vm6, %v260_v34, %v262_v33  ;;  %v269_v58 = vmul.f32 0.0, %v262_v33 }
  0xa9   :  { %v268_v55 = vmul.f32 %v263_v51, %v414_v7 }
  0xaa   :  { %273 = vrot.lane.b32.xlu1 %v267_v35, %s382_s1  ;;  %248 = vrot.lane.b32.xlu0 %v240_v32, %s381_s0 }
  0xab   :  { %v152_v38 = vpop.permute.xlu1 %151  ;;  %v154_v39 = vpop.permute.xlu0 %153 }
  0xac   :  { %v158_v42 = vsel %vm157_vm2, %v152_v38, %v154_v39 }
  0xad   :  { %162 = vst [vmem:[#allocation8 + $0x10] sm:$0xff] %v158_v42 }
  0xae   :  { %103 = vrot.lane.b32.xlu0 %v96_v40, %s385_s21  ;;  %72 = vrot.lane.b32.xlu1 %v65_v41, %s386_s22 }
  0xaf   :  { %v156_v45 = vpop.permute.xlu1 %155  ;;  %v175_v46 = vpop.permute.xlu0 %174 }
  0xb0   :  { %v159_v49 = vsel %vm157_vm2, %v154_v39, %v156_v45 }
  0xb1   :  { %163 = vst [vmem:[#allocation8 + $0x18] sm:$0xff] %v159_v49 }
  0xb2   :  { %217 = vrot.lane.b32.xlu0 %v210_v48, %s383_s19  ;;  %134 = vrot.lane.b32.xlu1 %v127_v47, %s384_s20 }
  0xb3   :  { %v177_v52 = vpop.permute.xlu1 %176  ;;  %v179_v53 = vpop.permute.xlu0 %178 }
  0xb4   :  { %v181_v56 = vsel %vm180_vm7, %v175_v46, %v177_v52  ;;  %v182_v57 = vsel %vm180_vm7, %v177_v52, %v179_v53 }
  0xb5   :  { %185 = vst [vmem:[#allocation8 + $0x70] sm:$0xff] %v181_v56  ;;  %186 = vst [vmem:[#allocation8 + $0x78] sm:$0xff] %v182_v57 }
  0xb6   :  { %275 = vrot.lane.b32.xlu0 %v268_v55, %s382_s1  ;;  %246 = vrot.lane.b32.xlu1 %v239_v54, %s381_s0 }
  0xba   :  { %277 = vrot.lane.b32.xlu1 %v269_v58, %s382_s1 }
 0x108   :  { %v71_v59 = vpop.permute.xlu0 %70  ;;  %v102_v60 = vpop.permute.xlu1 %101 }
 0x10c   :  { %v75_v61 = vpop.permute.xlu0 %74  ;;  %v106_v62 = vpop.permute.xlu1 %105 }
 0x110   :  { %v133_v63 = vpop.permute.xlu0 %132 }
 0x114   :  { %v216_v0 = vpop.permute.xlu1 %215  ;;  %v137_v1 = vpop.permute.xlu0 %136 }
 0x118   :  { %v220_v2 = vpop.permute.xlu1 %219  ;;  %v245_v3 = vpop.permute.xlu0 %244 }
 0x11c   :  { %v274_v4 = vpop.permute.xlu1 %273  ;;  %v249_v5 = vpop.permute.xlu0 %248 }
 0x120   :  { %v104_v6 = vpop.permute.xlu0 %103  ;;  %v73_v7 = vpop.permute.xlu1 %72 }
 0x121   :  { %v108_v8 = vsel %vm107_vm5, %v102_v60, %v104_v6  ;;  %v109_v9 = vsel %vm107_vm5, %v104_v6, %v106_v62  ;;  %v77_v10 = vsel %vm76_vm6, %v71_v59, %v73_v7  ;;  %v78_v11 = vsel %vm76_vm6, %v73_v7, %v75_v61 }
 0x122   :  { %112 = vst [vmem:[#allocation8 + $0x30] sm:$0xff] %v108_v8  ;;  %113 = vst [vmem:[#allocation8 + $0x38] sm:$0xff] %v109_v9 }
 0x123   :  { %81 = vst [vmem:[#allocation8] sm:$0xff] %v77_v10  ;;  %82 = vst [vmem:[#allocation8 + $0x8] sm:$0xff] %v78_v11 }
 0x124   :  { %v218_v12 = vpop.permute.xlu0 %217  ;;  %v135_v13 = vpop.permute.xlu1 %134 }
 0x125   :  { %v221_v14 = vsel %vm121_vm3, %v216_v0, %v218_v12  ;;  %v222_v15 = vsel %vm121_vm3, %v218_v12, %v220_v2  ;;  %v139_v16 = vsel %vm138_vm4, %v133_v63, %v135_v13  ;;  %v140_v17 = vsel %vm138_vm4, %v135_v13, %v137_v1 }
 0x126   :  { %225 = vst [vmem:[#allocation8 + $0x20] sm:$0xff] %v221_v14  ;;  %226 = vst [vmem:[#allocation8 + $0x28] sm:$0xff] %v222_v15 }
 0x127   :  { %143 = vst [vmem:[#allocation8 + $0x60] sm:$0xff] %v139_v16  ;;  %144 = vst [vmem:[#allocation8 + $0x68] sm:$0xff] %v140_v17 }
 0x128   :  { %v276_v18 = vpop.permute.xlu0 %275  ;;  %v247_v19 = vpop.permute.xlu1 %246 }
 0x129   :  { %v279_v20 = vsel %vm59_vm1, %v274_v4, %v276_v18  ;;  %v250_v21 = vsel %vm90_vm0, %v245_v3, %v247_v19  ;;  %v251_v22 = vsel %vm90_vm0, %v247_v19, %v249_v5 }
 0x12a   :  { %283 = vst [vmem:[#allocation8 + $0x80] sm:$0xff] %v279_v20  ;;  %254 = vst [vmem:[#allocation8 + $0x50] sm:$0xff] %v250_v21 }
 0x12b   :  { %255 = vst [vmem:[#allocation8 + $0x58] sm:$0xff] %v251_v22 }
 0x12c   :  { %v278_v23 = vpop.permute.xlu1 %277 }
 0x12d   :  { %v280_v24 = vsel %vm59_vm1, %v276_v18, %v278_v23 }
 0x12e   :  { %284 = vst [vmem:[#allocation8 + $0x88] sm:$0xff] %v280_v24 }
 0x12f   :  { %364 = shalt.err (!%p361_p0)
}
 0x130   :  { %294 = dma.vmem_to_hbm [thread:$0]  %s292_s26, 2304, %s489_s2, [#allocation5]  }
 0x131   :  { %377 = dma.done.wait [#allocation5], 2304  }
 0x132   :  { %378 = vsyncadd [#allocation5], 4294964992 }
 0x133   :  { %298 = vsyncpa [#allocation4], 1 }
 0x134   :  { %299 = vsyncpa [#allocation7], 1 }
 0x135   :  { %300 = vsyncpa [#allocation5], 1 }

</bundles_post_ra>
